<compile_context>
chip_gen: v6e
topology: v6e:2x2x1
jax: 0.10.0
libtpu: 0.0.40
codegen_flags: <defaults>
</compile_context>

<pallas_src>
import functools

import jax
import jax.numpy as jnp
from jax.experimental import pallas as pl
from jax.experimental.pallas import tpu as pltpu


def _reconstruction_kernel(v_ref, c_ref, p_ref, o_ref):
    # v_ref : (2*T_pad, K) bf16  rows [0:T]           = x-basis (even rows of V_pred_trunc)
    #                            rows [T_pad:T_pad+T] = y-basis (odd rows); rest zero-pad
    #                            grid-invariant (same block every lane-tile step)
    # c_ref : (K, L_TILE)  bf16  singular-space coords, lane l = b*N + n (b-major)
    # p_ref : (6, L_TILE)  f32   [r00/sca, r01/sca, r10/sca, r11/sca, ori_x, ori_y] per lane
    # o_ref : (2*T_pad, L_TILE) f32  rows [0:T_pad] -> x plane, rows [T_pad:] -> y plane
    M = jnp.dot(v_ref[...], c_ref[...], preferred_element_type=jnp.float32)  # (2*T_pad, L_TILE)
    t_pad = M.shape[0] // 2
    x = M[:t_pad, :]            # static slices on an 8-sublane boundary
    y = M[t_pad:, :]

    a00 = p_ref[0:1, :]         # (1, L_TILE) broadcasts over T_pad sublanes
    a01 = p_ref[1:2, :]
    a10 = p_ref[2:3, :]
    a11 = p_ref[3:4, :]
    orx = p_ref[4:5, :]
    ory = p_ref[5:6, :]

    # denormalize with 1/sca pre-folded into the rotation coefficients
    # NOTE: padded sublanes (rows T..T_pad) end up holding orx/ory, not zero;
    # the wrapper slices them away ([:T]) before returning.
    o_ref[:t_pad, :] = x * a00 + y * a01 + orx
    o_ref[t_pad:, :] = x * a10 + y * a11 + ory


# ----------------------------------------------------------------------------
# One-time prep (hoisted out of the forward path per the perf review).
# ----------------------------------------------------------------------------
def prepare_pred_basis(V_pred_FK, dim=2):
    """Build the stacked/padded x|y basis once per weight update (bf16 for the MXU)."""
    assert dim == 2, "kernel hardcodes the 2-plane (x/y) even/odd split of V"
    F, K = V_pred_FK.shape
    T = F // dim
    T_pad = ((T + 7) // 8) * 8
    V = V_pred_FK.astype(jnp.float32)
    V_cat = jnp.zeros((2 * T_pad, K), jnp.float32)
    V_cat = V_cat.at[:T, :].set(V[0::2, :]).at[T_pad:T_pad + T, :].set(V[1::2, :])
    return V_cat.astype(jnp.bfloat16)


def prepare_denorm_params(traj_ori_B12, traj_rot_B22, traj_sca_B11):
    """Fold 1/sca into the rotation once per TrajNorm-state update -> (6, B) f32."""
    B = traj_ori_B12.shape[0]
    inv_sca = 1.0 / traj_sca_B11.reshape(B).astype(jnp.float32)
    rot = traj_rot_B22.astype(jnp.float32)
    ori = traj_ori_B12.astype(jnp.float32)
    return jnp.stack(
        [rot[:, 0, 0] * inv_sca, rot[:, 0, 1] * inv_sca,
         rot[:, 1, 0] * inv_sca, rot[:, 1, 1] * inv_sca,
         ori[:, 0, 0], ori[:, 0, 1]],
        axis=0)                                                           # (6, B)


# ----------------------------------------------------------------------------
# Forward (== SingularSpace.reconstruction)
# ----------------------------------------------------------------------------
@functools.partial(jax.jit, static_argnames=("t_pred", "dim", "lane_tile"))
def singular_space_forward(C_pred_KBN, V_cat, params_B, *, t_pred, dim=2, lane_tile=1024):
    assert dim == 2
    K, B, N = C_pred_KBN.shape
    T = t_pred
    T_pad = V_cat.shape[0] // 2
    L = B * N

    # lane-dense layout: pad L up to a multiple of 128 (and of the lane tile)
    L128 = ((L + 127) // 128) * 128
    L_TILE = min(lane_tile, L128)
    L_pad = ((L + L_TILE - 1) // L_TILE) * L_TILE
    grid = (L_pad // L_TILE,)

    # b-major lanes (lane l = b*N + n): pure reshape, no transpose fusion.
    C_flat = C_pred_KBN.reshape(K, L).astype(jnp.bfloat16)                # (K, L)
    C_flat = jnp.pad(C_flat, ((0, 0), (0, L_pad - L)))                    # (K, L_pad)

    params = jnp.repeat(params_B.astype(jnp.float32), N, axis=1)          # (6, L) b-major
    params = jnp.pad(params, ((0, 0), (0, L_pad - L)))                    # (6, L_pad)

    out = pl.pallas_call(
        _reconstruction_kernel,
        out_shape=jax.ShapeDtypeStruct((2 * T_pad, L_pad), jnp.float32),
        grid=grid,
        in_specs=[
            pl.BlockSpec((2 * T_pad, K), lambda i: (0, 0)),               # V_cat (grid-invariant)
            pl.BlockSpec((K, L_TILE), lambda i: (0, i)),                  # C lane tile
            pl.BlockSpec((6, L_TILE), lambda i: (0, i)),                  # denorm params lane tile
        ],
        out_specs=pl.BlockSpec((2 * T_pad, L_TILE), lambda i: (0, i)),
        compiler_params=pltpu.CompilerParams(
            dimension_semantics=("parallel",),   # shards lane tiles across v7x TensorCores
        ),
    )(V_cat, C_flat, params)

    # assemble (N, B, T, dim): drop padded lanes, drop padded sublanes, transpose.
    xy = out[:, :L].reshape(2, T_pad, B, N)[:, :T]                        # (2, T, B, N)
    traj = jnp.transpose(xy, (3, 2, 1, 0))                                # (N, B, T, 2)
    return traj


if __name__ == "__main__":
    key = jax.random.PRNGKey(0)
    t_obs, t_pred, k, dim = 8, 12, 8, 2   # hyper_params.{obs_len, pred_len, k, traj_dim}
    B, N = 6, 4                           # agents, num_samples
    F = t_pred * dim

    k1, k2, k3 = jax.random.split(key, 3)
    # synthetic deterministic init of the V_pred_trunc_FK parameter
    V_pred = jax.random.normal(k1, (F, k), dtype=jnp.float32) / jnp.sqrt(F)
    # singular-space coordinates C_pred_KBN
    C_pred = jax.random.normal(k2, (k, B, N), dtype=jnp.float32)

    # TrajNorm state (set by a prior projection() call on obs_traj) — plain-JAX glue.
    # TODO(synk): truncated_SVD / BSpline parameter_initialization are offline setup,
    # not part of forward, and are not translated to Pallas.
    obs = jax.random.normal(k3, (B, t_obs, dim), dtype=jnp.float32)
    traj_ori = obs[:, -1:, :]                                    # (B, 1, 2)
    d = obs[:, -1, :] - obs[:, -3, :]                            # (B, 2)
    ang = jnp.arctan2(d[:, 1], d[:, 0])
    c, s = jnp.cos(ang), jnp.sin(ang)
    traj_rot = jnp.stack([jnp.stack([c, -s], axis=-1),
                          jnp.stack([s, c], axis=-1)], axis=-2)  # (B, 2, 2)
    nrm = jnp.maximum(jnp.linalg.norm(d, axis=-1), 1e-6)         # guard zero displacement
    traj_sca = (1.0 / nrm)[:, None, None]                        # (B, 1, 1)

    # hoisted constant prep (once per weight / TrajNorm-state update)
    V_cat = prepare_pred_basis(V_pred, dim=dim)
    params_B = prepare_denorm_params(traj_ori, traj_rot, traj_sca)

    out = singular_space_forward(C_pred, V_cat, params_B, t_pred=t_pred, dim=dim)
    out = jax.block_until_ready(out)

    # pure-JAX f32 reference of the same forward pass
    M = jnp.einsum('fk,nkb->nfb', V_pred, jnp.transpose(C_pred, (2, 0, 1)))
    ref = jnp.transpose(M, (0, 2, 1)).reshape(N, B, t_pred, dim)
    ref = ref / traj_sca
    ref = ref @ jnp.swapaxes(traj_rot, -1, -2)
    ref = ref + traj_ori

    assert out.shape == (N, B, t_pred, dim)
    # tolerance loosened vs f32 reference because V/C feed the MXU in bfloat16
    assert jnp.allclose(out, ref, rtol=5e-2, atol=5e-2)
    print("KERNEL_OK")
</pallas_src>

<mosaic_0001>
module attributes {stable_mosaic.version = 11 : i64} {
  func.func @_reconstruction_kernel(%arg0: i32, %arg1: memref<32x8xbf16, #tpu.memory_space<vmem>>, %arg2: memref<8x128xbf16, #tpu.memory_space<vmem>>, %arg3: memref<6x128xf32, #tpu.memory_space<vmem>>, %arg4: memref<32x128xf32, #tpu.memory_space<vmem>>) attributes {dimension_semantics = [#tpu.dimension_semantics<parallel>], iteration_bounds = array<i64: 1>, scalar_prefetch = 0 : i64, scratch_operands = 0 : i64, tpu.core_type = #tpu.core_type<tc>, window_params = [{pipeline_mode = #tpu.pipeline_mode<synchronous>, transform_indices = @transform_0, window_bounds = array<i64: 32, 8>}, {transform_indices = @transform_1, window_bounds = array<i64: 8, 128>}, {transform_indices = @transform_2, window_bounds = array<i64: 6, 128>}, {transform_indices = @transform_3, window_bounds = array<i64: 32, 128>}]} {
    %c0 = arith.constant 0 : index
    %c0_0 = arith.constant 0 : index
    %0 = vector.load %arg1[%c0, %c0_0] : memref<32x8xbf16, #tpu.memory_space<vmem>>, vector<32x8xbf16>
    %c0_1 = arith.constant 0 : index
    %c0_2 = arith.constant 0 : index
    %1 = vector.load %arg2[%c0_1, %c0_2] : memref<8x128xbf16, #tpu.memory_space<vmem>>, vector<8x128xbf16>
    %cst = arith.constant dense<0.000000e+00> : vector<32x128xf32>
    %2 = tpu.matmul %0, %1, %cst {dimension_numbers = #tpu.dot_dimension_numbers<[1], [0], [0], [1], [0, 0, 1, 1], [], []>} : vector<32x8xbf16>, vector<8x128xbf16>, vector<32x128xf32> -> vector<32x128xf32>
    %3 = vector.extract_strided_slice %2 {offsets = [0, 0], sizes = [16, 128], strides = [1, 1]} : vector<32x128xf32> to vector<16x128xf32>
    %4 = vector.extract_strided_slice %2 {offsets = [16, 0], sizes = [16, 128], strides = [1, 1]} : vector<32x128xf32> to vector<16x128xf32>
    %c0_3 = arith.constant 0 : index
    %c0_4 = arith.constant 0 : index
    %5 = vector.load %arg3[%c0_3, %c0_4] : memref<6x128xf32, #tpu.memory_space<vmem>>, vector<1x128xf32>
    %c1 = arith.constant 1 : index
    %c0_5 = arith.constant 0 : index
    %6 = vector.load %arg3[%c1, %c0_5] : memref<6x128xf32, #tpu.memory_space<vmem>>, vector<1x128xf32>
    %c2 = arith.constant 2 : index
    %c0_6 = arith.constant 0 : index
    %7 = vector.load %arg3[%c2, %c0_6] : memref<6x128xf32, #tpu.memory_space<vmem>>, vector<1x128xf32>
    %c3 = arith.constant 3 : index
    %c0_7 = arith.constant 0 : index
    %8 = vector.load %arg3[%c3, %c0_7] : memref<6x128xf32, #tpu.memory_space<vmem>>, vector<1x128xf32>
    %c4 = arith.constant 4 : index
    %c0_8 = arith.constant 0 : index
    %9 = vector.load %arg3[%c4, %c0_8] : memref<6x128xf32, #tpu.memory_space<vmem>>, vector<1x128xf32>
    %c5 = arith.constant 5 : index
    %c0_9 = arith.constant 0 : index
    %10 = vector.load %arg3[%c5, %c0_9] : memref<6x128xf32, #tpu.memory_space<vmem>>, vector<1x128xf32>
    %11 = vector.broadcast %5 : vector<1x128xf32> to vector<16x128xf32>
    %12 = arith.mulf %3, %11 : vector<16x128xf32>
    %13 = vector.broadcast %6 : vector<1x128xf32> to vector<16x128xf32>
    %14 = arith.mulf %4, %13 : vector<16x128xf32>
    %15 = arith.addf %12, %14 : vector<16x128xf32>
    %16 = vector.broadcast %9 : vector<1x128xf32> to vector<16x128xf32>
    %17 = arith.addf %15, %16 : vector<16x128xf32>
    %c0_10 = arith.constant 0 : index
    %c0_11 = arith.constant 0 : index
    %18 = vector.load %arg4[%c0_10, %c0_11] : memref<32x128xf32, #tpu.memory_space<vmem>>, vector<16x128xf32>
    tpu.vector_store %arg4[%c0_10, %c0_11], %17 {strides = array<i32>} : memref<32x128xf32, #tpu.memory_space<vmem>>, vector<16x128xf32>,
    %19 = vector.broadcast %7 : vector<1x128xf32> to vector<16x128xf32>
    %20 = arith.mulf %3, %19 : vector<16x128xf32>
    %21 = vector.broadcast %8 : vector<1x128xf32> to vector<16x128xf32>
    %22 = arith.mulf %4, %21 : vector<16x128xf32>
    %23 = arith.addf %20, %22 : vector<16x128xf32>
    %24 = vector.broadcast %10 : vector<1x128xf32> to vector<16x128xf32>
    %25 = arith.addf %23, %24 : vector<16x128xf32>
    %c16 = arith.constant 16 : index
    %c0_12 = arith.constant 0 : index
    %26 = vector.load %arg4[%c16, %c0_12] : memref<32x128xf32, #tpu.memory_space<vmem>>, vector<16x128xf32>
    tpu.vector_store %arg4[%c16, %c0_12], %25 {strides = array<i32>} : memref<32x128xf32, #tpu.memory_space<vmem>>, vector<16x128xf32>,
    return
  }
  func.func @transform_0(%arg0: i32) -> (i32, i32) {
    %c0_i32 = arith.constant 0 : i32
    %c0_i32_0 = arith.constant 0 : i32
    %c0_i32_1 = arith.constant 0 : i32
    return %c0_i32, %c0_i32_0 : i32, i32
  }
  func.func @transform_1(%arg0: i32) -> (i32, i32) {
    %c0_i32 = arith.constant 0 : i32
    %c0_i32_0 = arith.constant 0 : i32
    return %c0_i32, %arg0 : i32, i32
  }
  func.func @transform_2(%arg0: i32) -> (i32, i32) {
    %c0_i32 = arith.constant 0 : i32
    %c0_i32_0 = arith.constant 0 : i32
    return %c0_i32, %arg0 : i32, i32
  }
  func.func @transform_3(%arg0: i32) -> (i32, i32) {
    %c0_i32 = arith.constant 0 : i32
    %c0_i32_0 = arith.constant 0 : i32
    return %c0_i32, %arg0 : i32, i32
  }
}

</mosaic_0001>

<bundles_post_ra>
// kernel: singular_space_forward.1
= control target key start
LH: loop header
LB: loop body
LE: loop exit
PB: predicated region body
PF: predicated region fallthrough
CT: control target
= control target key end

     0   :  { %vm37_vm0 = vcmask 1043456   ;;  %vm30_vm1 = vcmask 64512   ;;  %s225_s1 = inlined_call_operand.vmem [shape: bf16[8,128], index: 1, kind: input, shape index: {}]   ;;  %s226_s0 = inlined_call_operand.vmem [shape: bf16[32,8], index: 0, kind: input, shape index: {}]   ;;  %s227_s2 = inlined_call_operand.vmem [shape: f32[6,128], index: 2, kind: input, shape index: {}]   ;;  %s228_s3 = inlined_call_operand.vmem [shape: f32[32,128], index: 3, kind: output, shape index: {}]  }
   0x1   :  { %v19_v0 = vld [vmem:[%s225_s1] sm:$0xf]  ;;  %v165_v3 = vld [vmem:[%s226_s0 + $0x8] sm:$0xff]   ;;  %v150_v15 = vld [vmem:[%s227_s2 + $0x4] ss:$0 sm:$0xff] }
   0x2   :  { %163 = vmatprep.subr.msk.bf16.mxu0 %vm37_vm0, %v19_v0  ;;  %v39_v1 = vsel %vm37_vm0, %v19_v0, 0  ;;  %v164_v2 = vld [vmem:[%s226_s0] sm:$0xff]  }
   0x3   :  { %158 = vmatpush3.bf16.msra.mxu0 %v39_v1  ;;  %159 = vmatprep.mubr.msk.bf16.mxu0 %vm30_vm1, %v164_v2  ;;  %v149_v4 = vld [vmem:[%s227_s2 + $0x1] ss:$0 sm:$0xff]  ;;  %v152_v6 = vld [vmem:[%s227_s2 + $0x3] ss:$0 sm:$0xff]  ;;  %v148_v7 = vld [vmem:[%s227_s2] ss:$0 sm:$0xff] }
   0x4   :  { %v151_v8 = vld [vmem:[%s227_s2 + $0x2] ss:$0 sm:$0xff]  ;;  %v153_v16 = vld [vmem:[%s227_s2 + $0x5] ss:$0 sm:$0xff] }
   0x6   :  { %160 = vmatmul.mubr.msk.bf16.vlgmr.msra.gmra.mxu0 %vm30_vm1, %v165_v3 }
  0xc6   :  { %v161_v5 = vpop.f32.mrf.mxu0 }
  0xc7   :  { %v106_v10 = vmul.f32 %v161_v5, %v149_v4  ;;  %v128_v11 = vmul.f32 %v161_v5, %v152_v6 }
  0xc8   :  { %v75_v9 = vpop.f32.mrf.mxu0 }
  0xc9   :  { %v100_v12 = vmul.f32 %v148_v7, %v75_v9  ;;  %v122_v13 = vmul.f32 %v151_v8, %v75_v9 }
  0xca   :  { %v162_v14 = vpop.f32.mrf.mxu0 }
  0xcb   :  { %v108_v17 = vadd.f32 %v106_v10, %v100_v12  ;;  %v130_v18 = vadd.f32 %v128_v11, %v122_v13  ;;  %v107_v19 = vmul.f32 %v162_v14, %v149_v4  ;;  %v129_v20 = vmul.f32 %v162_v14, %v152_v6 }
  0xcc   :  { %v78_v21 = vpop.f32.mrf.mxu0 }
  0xcd   :  { %v101_v22 = vmul.f32 %v148_v7, %v78_v21  ;;  %v114_v23 = vadd.f32 %v150_v15, %v108_v17  ;;  %v123_v24 = vmul.f32 %v151_v8, %v78_v21  ;;  %v136_v25 = vadd.f32 %v153_v16, %v130_v18 }
  0xcf   :  { %v109_v26 = vadd.f32 %v107_v19, %v101_v22  ;;  %116 = vst [vmem:[%s228_s3] sm:$0xff] %v114_v23  ;;  %v131_v27 = vadd.f32 %v129_v20, %v123_v24  ;;  %138 = vst [vmem:[%s228_s3 + $0x10] sm:$0xff] %v136_v25 }
  0xd1   :  { %v115_v28 = vadd.f32 %v150_v15, %v109_v26  ;;  %v137_v29 = vadd.f32 %v153_v16, %v131_v27 }
  0xd3   :  { %117 = vst [vmem:[%s228_s3 + $0x8] sm:$0xff] %v115_v28  ;;  %139 = vst [vmem:[%s228_s3 + $0x18] sm:$0xff] %v137_v29 }

</bundles_post_ra>
